<compile_context>
chip_gen: v7x
topology: tpu7x:2x2x1
jax: 0.10.0
libtpu: 0.0.40
codegen_flags: <defaults>
</compile_context>

<pallas_src>
import functools

import jax
import jax.numpy as jnp
from jax.experimental import pallas as pl
from jax.experimental.pallas import tpu as pltpu


def _round_up(x, m):
    return ((x + m - 1) // m) * m


def _gru_kernel(h_ref, m0_ref, m1_ref, w_h_ref, w_m0_ref, w_m1_ref,
                w_hh_ref, b_ref, out_ref):
    HL = h_ref.shape[-1]                 # folded lane width (128 when H | 128)
    dot_dt = w_m0_ref.dtype              # bf16 MXU operands

    h = h_ref[...]
    hf = h.astype(jnp.float32)           # gating math in f32
    hd = h.astype(dot_dt)
    m0 = m0_ref[...].astype(dot_dt)
    m1 = m1_ref[...].astype(dot_dt)

    # [z_pre | r_pre | h_hat_pre (m0/m1 part)] : accumulated partial dots,
    # no lane-axis concat of the inputs.
    pre = jnp.dot(m0, w_m0_ref[...], preferred_element_type=jnp.float32)
    pre = pre + jnp.dot(m1, w_m1_ref[...], preferred_element_type=jnp.float32)
    pre = pre + b_ref[...].astype(jnp.float32)          # single bias add

    # h feeds only the z|r gates -> (HL, 2HL) slab, no zero-padded block.
    zr = jax.nn.sigmoid(
        pre[:, :2 * HL]
        + jnp.dot(hd, w_h_ref[...], preferred_element_type=jnp.float32))
    z = zr[:, :HL]
    r = zr[:, HL:]

    rh = (r * hf).astype(dot_dt)
    h_hat = jnp.tanh(
        pre[:, 2 * HL:]
        + jnp.dot(rh, w_hh_ref[...], preferred_element_type=jnp.float32))

    # (1-z)*h + z*h_hat  ==  h + z*(h_hat - h)
    out_ref[...] = (hf + z * (h_hat - hf)).astype(out_ref.dtype)


def prepare_params(params, dtype=jnp.bfloat16):
    """One-time weight packing (hoisted out of the per-step forward).

    Produces lane-folded, block-diagonal bf16 weight slabs:
      w_h  : (HL, 2HL)  -> [z | r] contribution of h
      w_m0 : (HL, 3HL)  -> [z | r | h_hat] contribution of m_t_0
      w_m1 : (HL, 3HL)  -> [z | r | h_hat] contribution of m_t_1
      w_hh : (HL,  HL)  -> h_hat contribution of (r*h)
      b    : (1,  3HL)  -> folded biases (f32)
    where HL = F*H and F = 128//H when H divides 128 (else F = 1).
    """
    H = params["wz_t"].shape[1]
    F = 128 // H if (H < 128 and 128 % H == 0) else 1
    eye = jnp.eye(F, dtype=jnp.float32)

    def bd(w):  # (H, Hout) -> block-diagonal (F*H, F*Hout)
        w = w.astype(jnp.float32)
        return jnp.kron(eye, w) if F > 1 else w

    def blocks(w):  # split (3H, H) into the h / m0 / m1 sub-blocks
        return w[:H], w[H:2 * H], w[2 * H:]

    wz_h, wz_m0, wz_m1 = blocks(params["wz_t"])
    wr_h, wr_m0, wr_m1 = blocks(params["wr_t"])
    wh_h, wh_m0, wh_m1 = blocks(params["wh_t"])

    def fold_b(b):
        return jnp.tile(b, (1, F)) if F > 1 else b

    return {
        "w_h": jnp.concatenate([bd(wz_h), bd(wr_h)], axis=1).astype(dtype),
        "w_m0": jnp.concatenate([bd(wz_m0), bd(wr_m0), bd(wh_m0)],
                                axis=1).astype(dtype),
        "w_m1": jnp.concatenate([bd(wz_m1), bd(wr_m1), bd(wh_m1)],
                                axis=1).astype(dtype),
        "w_hh": bd(wh_h).astype(dtype),
        "b": jnp.concatenate([fold_b(params["bz"]), fold_b(params["br"]),
                              fold_b(params["bh"])], axis=1).astype(jnp.float32),
    }


@jax.jit
def gru_forward(h, m_t_0, m_t_1, packed):
    """h, m_t_0, m_t_1: (B, N, H). packed: output of prepare_params."""
    B, N, H = h.shape
    HL = packed["w_hh"].shape[0]
    F = HL // H
    M = B * N

    # Fold F consecutive rows into one 128-lane row (free reshape). Pad rows
    # only if M is not a multiple of F (not the case for typical shapes).
    Mp = _round_up(M, F)
    rows = Mp // F

    def fold(x):
        x2 = x.reshape(M, H)
        if Mp != M:
            x2 = jnp.pad(x2, ((0, Mp - M), (0, 0)))
        return x2.reshape(rows, HL)

    h2, m02, m12 = fold(h), fold(m_t_0), fold(m_t_1)

    # Row-tile sizing: single grid step whenever the whole problem fits a
    # ~2 MiB/input tile (per-step overhead ~0.35 us would otherwise dominate
    # this tiny-per-row workload); otherwise a byte-budgeted tile with the
    # ragged tail handled by Pallas' masked stores (no wrapper pad / slice).
    itemsize = jnp.dtype(h.dtype).itemsize
    cap = max(8, (2 * 1024 * 1024 // (HL * itemsize)) // 8 * 8)
    if rows <= cap:
        tile_rows, grid_m = rows, 1
    else:
        tile_rows, grid_m = cap, pl.cdiv(rows, cap)

    row_spec = pl.BlockSpec((tile_rows, HL), lambda i: (i, 0))
    w_h_spec = pl.BlockSpec((HL, 2 * HL), lambda i: (0, 0))
    w_m_spec = pl.BlockSpec((HL, 3 * HL), lambda i: (0, 0))
    w_hh_spec = pl.BlockSpec((HL, HL), lambda i: (0, 0))
    b_spec = pl.BlockSpec((1, 3 * HL), lambda i: (0, 0))

    w_itemsize = jnp.dtype(packed["w_m0"].dtype).itemsize
    cost = pl.CostEstimate(
        flops=2 * 9 * rows * HL * HL,
        transcendentals=3 * rows * HL,
        bytes_accessed=(4 * rows * HL * itemsize
                        + 9 * HL * HL * w_itemsize + 3 * HL * 4),
    )

    out = pl.pallas_call(
        _gru_kernel,
        out_shape=jax.ShapeDtypeStruct((rows, HL), h.dtype),
        grid_spec=pltpu.PrefetchScalarGridSpec(
            num_scalar_prefetch=0,
            grid=(grid_m,),
            in_specs=[row_spec, row_spec, row_spec,
                      w_h_spec, w_m_spec, w_m_spec, w_hh_spec, b_spec],
            out_specs=row_spec,
        ),
        compiler_params=pltpu.CompilerParams(
            dimension_semantics=("parallel",) if grid_m > 1 else ("arbitrary",),
            vmem_limit_bytes=48 * 1024 * 1024,
        ),
        cost_estimate=cost,
    )(h2, m02, m12, packed["w_h"], packed["w_m0"], packed["w_m1"],
      packed["w_hh"], packed["b"])

    out = out.reshape(Mp, H)
    if Mp != M:
        out = out[:M]
    return out.reshape(B, N, H)


def init_params(key, hidden_dim, dtype=jnp.float32):
    """Deterministic init matching nn.Linear(3H, H) shapes.

    PyTorch weight is (H, 3H); we store the transpose (3H, H) so rows @ W
    computes the same linear layer.
    """
    H = hidden_dim
    bound = 1.0 / jnp.sqrt(3.0 * H)
    ks = jax.random.split(key, 6)

    def u(k, shape):
        return jax.random.uniform(k, shape, dtype, minval=-bound, maxval=bound)

    return {
        "wz_t": u(ks[0], (3 * H, H)), "bz": u(ks[1], (1, H)),
        "wr_t": u(ks[2], (3 * H, H)), "br": u(ks[3], (1, H)),
        "wh_t": u(ks[4], (3 * H, H)), "bh": u(ks[5], (1, H)),
    }


def gru_reference(h, m_t_0, m_t_1, params):
    """Plain-JAX f32 reference mirroring the PyTorch forward."""
    a = jnp.concatenate([h, m_t_0, m_t_1], axis=2)
    z = jax.nn.sigmoid(a @ params["wz_t"] + params["bz"][0])
    r = jax.nn.sigmoid(a @ params["wr_t"] + params["br"][0])
    joined = jnp.concatenate([r * h, m_t_0, m_t_1], axis=2)
    h_hat = jnp.tanh(joined @ params["wh_t"] + params["bh"][0])
    return (1.0 - z) * h + z * h_hat


if __name__ == "__main__":
    key = jax.random.PRNGKey(0)
    B, N, H = 2, 8, 32  # batch, nodes/seq, hidden_dim

    k_h, k_m0, k_m1, k_p = jax.random.split(key, 4)
    h = jax.random.normal(k_h, (B, N, H), jnp.float32)
    m_t_0 = jax.random.normal(k_m0, (B, N, H), jnp.float32)
    m_t_1 = jax.random.normal(k_m1, (B, N, H), jnp.float32)
    params = init_params(k_p, H)

    packed = prepare_params(params)               # one-time, outside hot path
    packed = jax.block_until_ready(packed)

    out = gru_forward(h, m_t_0, m_t_1, packed)
    out = jax.block_until_ready(out)

    ref = gru_reference(h, m_t_0, m_t_1, params)
    assert out.shape == (B, N, H)
    # bf16 MXU operands -> relaxed tolerance vs the f32 reference.
    assert jnp.allclose(out, ref, atol=3e-2, rtol=3e-2), "mismatch vs reference"

    print("KERNEL_OK")
</pallas_src>

<mosaic_0001>
module attributes {stable_mosaic.version = 11 : i64} {
  func.func @_gru_kernel(%arg0: i32, %arg1: memref<4x128xf32, #tpu.memory_space<vmem>>, %arg2: memref<4x128xf32, #tpu.memory_space<vmem>>, %arg3: memref<4x128xf32, #tpu.memory_space<vmem>>, %arg4: memref<128x256xbf16, #tpu.memory_space<vmem>>, %arg5: memref<128x384xbf16, #tpu.memory_space<vmem>>, %arg6: memref<128x384xbf16, #tpu.memory_space<vmem>>, %arg7: memref<128x128xbf16, #tpu.memory_space<vmem>>, %arg8: memref<1x384xf32, #tpu.memory_space<vmem>>, %arg9: memref<4x128xf32, #tpu.memory_space<vmem>>) attributes {dimension_semantics = [#tpu.dimension_semantics<arbitrary>], iteration_bounds = array<i64: 1>, scalar_prefetch = 0 : i64, scratch_operands = 0 : i64, tpu.core_type = #tpu.core_type<tc>, window_params = [{transform_indices = @transform_0, window_bounds = array<i64: 4, 128>}, {transform_indices = @transform_1, window_bounds = array<i64: 4, 128>}, {transform_indices = @transform_2, window_bounds = array<i64: 4, 128>}, {pipeline_mode = #tpu.pipeline_mode<synchronous>, transform_indices = @transform_3, window_bounds = array<i64: 128, 256>}, {pipeline_mode = #tpu.pipeline_mode<synchronous>, transform_indices = @transform_4, window_bounds = array<i64: 128, 384>}, {pipeline_mode = #tpu.pipeline_mode<synchronous>, transform_indices = @transform_5, window_bounds = array<i64: 128, 384>}, {pipeline_mode = #tpu.pipeline_mode<synchronous>, transform_indices = @transform_6, window_bounds = array<i64: 128, 128>}, {pipeline_mode = #tpu.pipeline_mode<synchronous>, transform_indices = @transform_7, window_bounds = array<i64: 1, 384>}, {transform_indices = @transform_8, window_bounds = array<i64: 4, 128>}]} {
    %c0 = arith.constant 0 : index
    %c0_0 = arith.constant 0 : index
    %0 = vector.load %arg1[%c0, %c0_0] : memref<4x128xf32, #tpu.memory_space<vmem>>, vector<4x128xf32>
    %1 = arith.truncf %0 : vector<4x128xf32> to vector<4x128xbf16>
    %c0_1 = arith.constant 0 : index
    %c0_2 = arith.constant 0 : index
    %2 = vector.load %arg2[%c0_1, %c0_2] : memref<4x128xf32, #tpu.memory_space<vmem>>, vector<4x128xf32>
    %3 = arith.truncf %2 : vector<4x128xf32> to vector<4x128xbf16>
    %c0_3 = arith.constant 0 : index
    %c0_4 = arith.constant 0 : index
    %4 = vector.load %arg3[%c0_3, %c0_4] : memref<4x128xf32, #tpu.memory_space<vmem>>, vector<4x128xf32>
    %5 = arith.truncf %4 : vector<4x128xf32> to vector<4x128xbf16>
    %c0_5 = arith.constant 0 : index
    %c0_6 = arith.constant 0 : index
    %6 = vector.load %arg5[%c0_5, %c0_6] : memref<128x384xbf16, #tpu.memory_space<vmem>>, vector<128x384xbf16>
    %cst = arith.constant dense<0.000000e+00> : vector<4x384xf32>
    %7 = tpu.matmul %3, %6, %cst {dimension_numbers = #tpu.dot_dimension_numbers<[1], [0], [0], [1], [0, 0, 1, 1], [], []>} : vector<4x128xbf16>, vector<128x384xbf16>, vector<4x384xf32> -> vector<4x384xf32>
    %c0_7 = arith.constant 0 : index
    %c0_8 = arith.constant 0 : index
    %8 = vector.load %arg6[%c0_7, %c0_8] : memref<128x384xbf16, #tpu.memory_space<vmem>>, vector<128x384xbf16>
    %cst_9 = arith.constant dense<0.000000e+00> : vector<4x384xf32>
    %9 = tpu.matmul %5, %8, %cst_9 {dimension_numbers = #tpu.dot_dimension_numbers<[1], [0], [0], [1], [0, 0, 1, 1], [], []>} : vector<4x128xbf16>, vector<128x384xbf16>, vector<4x384xf32> -> vector<4x384xf32>
    %10 = arith.addf %7, %9 : vector<4x384xf32>
    %c0_10 = arith.constant 0 : index
    %c0_11 = arith.constant 0 : index
    %11 = vector.load %arg8[%c0_10, %c0_11] : memref<1x384xf32, #tpu.memory_space<vmem>>, vector<1x384xf32>
    %12 = vector.broadcast %11 : vector<1x384xf32> to vector<4x384xf32>
    %13 = arith.addf %10, %12 : vector<4x384xf32>
    %14 = vector.extract_strided_slice %13 {offsets = [0, 0], sizes = [4, 256], strides = [1, 1]} : vector<4x384xf32> to vector<4x256xf32>
    %c0_12 = arith.constant 0 : index
    %c0_13 = arith.constant 0 : index
    %15 = vector.load %arg4[%c0_12, %c0_13] : memref<128x256xbf16, #tpu.memory_space<vmem>>, vector<128x256xbf16>
    %cst_14 = arith.constant dense<0.000000e+00> : vector<4x256xf32>
    %16 = tpu.matmul %1, %15, %cst_14 {dimension_numbers = #tpu.dot_dimension_numbers<[1], [0], [0], [1], [0, 0, 1, 1], [], []>} : vector<4x128xbf16>, vector<128x256xbf16>, vector<4x256xf32> -> vector<4x256xf32>
    %17 = arith.addf %14, %16 : vector<4x256xf32>
    %18 = arith.negf %17 : vector<4x256xf32>
    %19 = math.exp %18 : vector<4x256xf32>
    %cst_15 = arith.constant 1.000000e+00 : f32
    %20 = vector.broadcast %cst_15 : f32 to vector<4x256xf32>
    %21 = arith.addf %20, %19 : vector<4x256xf32>
    %22 = arith.divf %20, %21 : vector<4x256xf32>
    %23 = vector.extract_strided_slice %22 {offsets = [0, 0], sizes = [4, 128], strides = [1, 1]} : vector<4x256xf32> to vector<4x128xf32>
    %24 = vector.extract_strided_slice %22 {offsets = [0, 128], sizes = [4, 128], strides = [1, 1]} : vector<4x256xf32> to vector<4x128xf32>
    %25 = arith.mulf %24, %0 : vector<4x128xf32>
    %26 = arith.truncf %25 : vector<4x128xf32> to vector<4x128xbf16>
    %27 = vector.extract_strided_slice %13 {offsets = [0, 256], sizes = [4, 128], strides = [1, 1]} : vector<4x384xf32> to vector<4x128xf32>
    %c0_16 = arith.constant 0 : index
    %c0_17 = arith.constant 0 : index
    %28 = vector.load %arg7[%c0_16, %c0_17] : memref<128x128xbf16, #tpu.memory_space<vmem>>, vector<128x128xbf16>
    %cst_18 = arith.constant dense<0.000000e+00> : vector<4x128xf32>
    %29 = tpu.matmul %26, %28, %cst_18 {dimension_numbers = #tpu.dot_dimension_numbers<[1], [0], [0], [1], [0, 0, 1, 1], [], []>} : vector<4x128xbf16>, vector<128x128xbf16>, vector<4x128xf32> -> vector<4x128xf32>
    %30 = arith.addf %27, %29 : vector<4x128xf32>
    %31 = math.tanh %30 : vector<4x128xf32>
    %32 = arith.subf %31, %0 : vector<4x128xf32>
    %33 = arith.mulf %23, %32 : vector<4x128xf32>
    %34 = arith.addf %0, %33 : vector<4x128xf32>
    %c0_19 = arith.constant 0 : index
    %c0_20 = arith.constant 0 : index
    %35 = vector.load %arg9[%c0_19, %c0_20] : memref<4x128xf32, #tpu.memory_space<vmem>>, vector<4x128xf32>
    tpu.vector_store %arg9[%c0_19, %c0_20], %34 {strides = array<i32>} : memref<4x128xf32, #tpu.memory_space<vmem>>, vector<4x128xf32>,
    return
  }
  func.func @transform_0(%arg0: i32) -> (i32, i32) {
    %c0_i32 = arith.constant 0 : i32
    %c0_i32_0 = arith.constant 0 : i32
    return %arg0, %c0_i32 : i32, i32
  }
  func.func @transform_1(%arg0: i32) -> (i32, i32) {
    %c0_i32 = arith.constant 0 : i32
    %c0_i32_0 = arith.constant 0 : i32
    return %arg0, %c0_i32 : i32, i32
  }
  func.func @transform_2(%arg0: i32) -> (i32, i32) {
    %c0_i32 = arith.constant 0 : i32
    %c0_i32_0 = arith.constant 0 : i32
    return %arg0, %c0_i32 : i32, i32
  }
  func.func @transform_3(%arg0: i32) -> (i32, i32) {
    %c0_i32 = arith.constant 0 : i32
    %c0_i32_0 = arith.constant 0 : i32
    %c0_i32_1 = arith.constant 0 : i32
    return %c0_i32, %c0_i32_0 : i32, i32
  }
  func.func @transform_4(%arg0: i32) -> (i32, i32) {
    %c0_i32 = arith.constant 0 : i32
    %c0_i32_0 = arith.constant 0 : i32
    %c0_i32_1 = arith.constant 0 : i32
    return %c0_i32, %c0_i32_0 : i32, i32
  }
  func.func @transform_5(%arg0: i32) -> (i32, i32) {
    %c0_i32 = arith.constant 0 : i32
    %c0_i32_0 = arith.constant 0 : i32
    %c0_i32_1 = arith.constant 0 : i32
    return %c0_i32, %c0_i32_0 : i32, i32
  }
  func.func @transform_6(%arg0: i32) -> (i32, i32) {
    %c0_i32 = arith.constant 0 : i32
    %c0_i32_0 = arith.constant 0 : i32
    %c0_i32_1 = arith.constant 0 : i32
    return %c0_i32, %c0_i32_0 : i32, i32
  }
  func.func @transform_7(%arg0: i32) -> (i32, i32) {
    %c0_i32 = arith.constant 0 : i32
    %c0_i32_0 = arith.constant 0 : i32
    %c0_i32_1 = arith.constant 0 : i32
    return %c0_i32, %c0_i32_0 : i32, i32
  }
  func.func @transform_8(%arg0: i32) -> (i32, i32) {
    %c0_i32 = arith.constant 0 : i32
    %c0_i32_0 = arith.constant 0 : i32
    return %arg0, %c0_i32 : i32, i32
  }
}

</mosaic_0001>

<bundles_post_ra>
// kernel: gru_forward.1
= control target key start
LH: loop header
LB: loop body
LE: loop exit
PB: predicated region body
PF: predicated region fallthrough
CT: control target
= control target key end

     0   :  { %13 = vsyncpa [#allocation3], 0  ;;  %s1398_s0 = inlined_call_operand.vmem [shape: f32[4,128], index: 0, kind: input, shape index: {}]   ;;  %s1399_s1 = inlined_call_operand.vmem [shape: f32[4,128], index: 1, kind: input, shape index: {}]   ;;  %s1400_s2 = inlined_call_operand.vmem [shape: f32[4,128], index: 2, kind: input, shape index: {}]   ;;  %s1401_s3 = inlined_call_operand.hbm [shape: bf16[128,256], index: 3, kind: input, shape index: {}]   ;;  %s1402_s4 = inlined_call_operand.hbm [shape: bf16[128,384], index: 4, kind: input, shape index: {}]   ;;  %s1403_s5 = inlined_call_operand.hbm [shape: bf16[128,384], index: 5, kind: input, shape index: {}]   ;;  %s1404_s6 = inlined_call_operand.vmem [shape: bf16[128,128], index: 6, kind: input, shape index: {}]   ;;  %s1405_s7 = inlined_call_operand.vmem [shape: f32[1,384], index: 7, kind: input, shape index: {}]   ;;  %s1406_s8 = inlined_call_operand.vmem [shape: f32[4,128], index: 8, kind: output, shape index: {}]  }
   0x1   :  { %14 = vsyncpa [#allocation5], 0  ;;  %s1214_s27 = smov [#allocation4]   ;;  %s1144_s9 = scalar_lea.hbm %s1402_s4, 3072 }
   0x2   :  { %s38_s28 = sshll.u32 %s1214_s27, 4  ;;  %p1145_p0 = scmp.ne.s32.totalorder %s1402_s4, %s1144_s9  ;;  %s39_s28 = int_to_ptr.vmem [resolvable:$true] %s38_s28 }
   0x3   :  { %p1148_p1 = scmp.lt.u32.totalorder %s1144_s9, %s1402_s4 }
   0x5   :  { %p1150_p2 = pnand %p1148_p1, %p1145_p0 }
   0x7   :  { %1153 = shalt.err (!%p1150_p2)
}
   0x8   :  { %s1154_s14 = scalar_lea.vmem %s39_s28, 3072  ;;  %p1159_p4 = scmp.lt.s32.totalorder %s39_s28, %s39_s28 }
   0x9   :  { %p1155_p3 = scmp.ne.s32.totalorder %s39_s28, %s1154_s14  ;;  %p1160_p5 = scmp.lt.s32.totalorder %s1154_s14, %s1154_s14 }
   0xb   :  { %p1161_p6 = por %p1160_p5, %p1159_p4 }
   0xd   :  { %p1162_p7 = pnand %p1161_p6, %p1155_p3 }
   0xf   :  { %1165 = shalt.err (!%p1162_p7)
}
  0x10   :  { %s1215_s15 = smov 192   ;;  %s1216_s16 = smov 12  }
  0x11   :  { %44 = dma.hbm_to_vmem [thread:$0]  %s1402_s4, 3072, %s39_s28, [#allocation5], %s1215_s15, %s1215_s15, %s1216_s16  }
  0x12   :  { %s1217_s19 = smov [#allocation2]   ;;  %s1166_s23 = scalar_lea.hbm %s1401_s3, 2048 }
  0x13   :  { %s26_s20 = sshll.u32 %s1217_s19, 4  ;;  %p1167_p8 = scmp.ne.s32.totalorder %s1401_s3, %s1166_s23  ;;  %s27_s20 = int_to_ptr.vmem [resolvable:$true] %s26_s20 }
  0x14   :  { %p1170_p9 = scmp.lt.u32.totalorder %s1166_s23, %s1401_s3 }
  0x16   :  { %p1172_p10 = pnand %p1170_p9, %p1167_p8 }
  0x18   :  { %1175 = shalt.err (!%p1172_p10)
}
  0x19   :  { %s1176_s29 = scalar_lea.vmem %s27_s20, 2048  ;;  %p1181_p12 = scmp.lt.s32.totalorder %s27_s20, %s27_s20 }
  0x1a   :  { %p1177_p11 = scmp.ne.s32.totalorder %s27_s20, %s1176_s29  ;;  %p1182_p13 = scmp.lt.s32.totalorder %s1176_s29, %s1176_s29 }
  0x1c   :  { %p1183_p0 = por %p1182_p13, %p1181_p12 }
  0x1e   :  { %p1184_p1 = pnand %p1183_p0, %p1177_p11 }
  0x20   :  { %1187 = shalt.err (!%p1184_p1)
}
  0x21   :  { %s1218_s4 = smov 128   ;;  %s1219_s28 = smov 8  }
  0x22   :  { %32 = dma.hbm_to_vmem [thread:$0]  %s1401_s3, 2048, %s27_s20, [#allocation3], %s1218_s4, %s1218_s4, %s1219_s28  }
  0x23   :  { %s1220_s10 = smov [#allocation6]   ;;  %s1188_s14 = scalar_lea.hbm %s1403_s5, 3072 }
  0x24   :  { %s50_s11 = sshll.u32 %s1220_s10, 4  ;;  %p1189_p2 = scmp.ne.s32.totalorder %s1403_s5, %s1188_s14  ;;  %s51_s11 = int_to_ptr.vmem [resolvable:$true] %s50_s11 }
  0x25   :  { %p1192_p3 = scmp.lt.u32.totalorder %s1188_s14, %s1403_s5 }
  0x27   :  { %p1194_p4 = pnand %p1192_p3, %p1189_p2 }
  0x29   :  { %1197 = shalt.err (!%p1194_p4)
}
  0x2a   :  { %s1198_s22 = scalar_lea.vmem %s51_s11, 3072  ;;  %p1203_p6 = scmp.lt.s32.totalorder %s51_s11, %s51_s11 }
  0x2b   :  { %p1199_p5 = scmp.ne.s32.totalorder %s51_s11, %s1198_s22  ;;  %p1204_p7 = scmp.lt.s32.totalorder %s1198_s22, %s1198_s22 }
  0x2d   :  { %p1205_p8 = por %p1204_p7, %p1203_p6 }
  0x2f   :  { %p1206_p9 = pnand %p1205_p8, %p1199_p5 }
  0x31   :  { %1209 = shalt.err (!%p1206_p9)
}
  0x32   :  { %56 = dma.hbm_to_vmem [thread:$0]  %s1403_s5, 3072, %s51_s11, [#allocation5], %s1215_s15, %s1215_s15, %s1216_s16  }
  0x33   :  { %1210 = dma.done.wait [#allocation3], 2048  }
  0x34   :  { %1211 = vsyncadd [#allocation3], 4294965248 }
  0x35   :  { %1212 = dma.done.wait [#allocation5], 6144  }
  0x36   :  { %1213 = vsyncadd [#allocation5], 4294961152  ;;  %v1221_v0 = vmov 0   ;;  %v1222_v1 = vmov 0.0   ;;  %vm1223_vm0 = vmmov 0  }
  0x37   :  { %301 = vmatprep.mubr.bf16.mxu0 %v1221_v0  ;;  %949 = vmatprep.subr.bf16.mxu1 %v1222_v1  ;;  %v1038_v2 = vld [vmem:[#allocation6 + $0x4] ss:$12 sps:$4 sm:$0xff]   ;;  %v1040_v3 = vld [vmem:[#allocation6] ss:$12 sps:$4 sm:$0xff]   ;;  %v1041_v4 = vld [vmem:[#allocation6 + $0x1c] ss:$12 sps:$4 sm:$0xff]  }
  0x38   :  { %965 = vmatprep.mubr.msk.bf16.mxu1 %vm1223_vm0, %v1222_v1  ;;  %269 = vmatprep.subr.bf16.mxu0 %v1038_v2  ;;  %v1043_v5 = vld [vmem:[#allocation6 + $0x18] ss:$12 sps:$4 sm:$0xff]   ;;  %v1044_v6 = vld [vmem:[#allocation6 + $0x34] ss:$12 sps:$4 sm:$0xff]   ;;  %v1046_v7 = vld [vmem:[#allocation6 + $0x30] ss:$12 sps:$4 sm:$0xff]  }
  0x39   :  { %270 = vmatpush1.bf16.msra.mxu0 %v1040_v3  ;;  %v1047_v8 = vld [vmem:[#allocation6 + $0x4c] ss:$12 sps:$4 sm:$0xff]   ;;  %v1049_v9 = vld [vmem:[#allocation6 + $0x48] ss:$12 sps:$4 sm:$0xff]   ;;  %v1050_v10 = vld [vmem:[#allocation6 + $0x64] ss:$12 sps:$4 sm:$0xff]  }
  0x3a   :  { %271 = vmatprep.subr.bf16.mxu0 %v1041_v4  ;;  %v1052_v11 = vld [vmem:[#allocation6 + $0x60] ss:$12 sps:$4 sm:$0xff]   ;;  %v1053_v12 = vld [vmem:[#allocation6 + $0x7c] ss:$12 sps:$4 sm:$0xff]   ;;  %v1055_v13 = vld [vmem:[#allocation6 + $0x78] ss:$12 sps:$4 sm:$0xff]  }
  0x3b   :  { %v1056_v14 = vld [vmem:[#allocation6 + $0x94] ss:$12 sps:$4 sm:$0xff]   ;;  %v1058_v15 = vld [vmem:[#allocation6 + $0x90] ss:$12 sps:$4 sm:$0xff]   ;;  %v1059_v16 = vld [vmem:[#allocation6 + $0xac] ss:$12 sps:$4 sm:$0xff]  }
  0x3c   :  { %v1061_v17 = vld [vmem:[#allocation6 + $0xa8] ss:$12 sps:$4 sm:$0xff]   ;;  %v75_v18 = vld [vmem:[%s1400_s2] sm:$0xf]  ;;  %v1064_v19 = vld [vmem:[#allocation4 + $0x4] ss:$12 sps:$4 sm:$0xff]  }
  0x3d   :  { %272 = vmatpush1.bf16.msra.mxu0 %v1043_v5  ;;  %v1318_v20 = vpack.c.bf16 %v75_v18, %v75_v18  ;;  %v1062_v21 = vld [vmem:[#allocation4] ss:$12 sps:$4 sm:$0xff]   ;;  %v1067_v22 = vld [vmem:[#allocation4 + $0x1c] ss:$12 sps:$4 sm:$0xff]   ;;  %v1065_v24 = vld [vmem:[#allocation4 + $0x18] ss:$12 sps:$4 sm:$0xff]  }
  0x3e   :  { %273 = vmatprep.subr.bf16.mxu0 %v1044_v6  ;;  %v1110_v23 = vld [vmem:[#allocation6 + $0x8] ss:$12 sps:$4 sm:$0xff]   ;;  %v1111_v26 = vld [vmem:[#allocation6 + $0x20] ss:$12 sps:$4 sm:$0xff]   ;;  %v1068_v27 = vld [vmem:[#allocation4 + $0x30] ss:$12 sps:$4 sm:$0xff]  }
  0x3f   :  { %v1070_v25 = vld [vmem:[#allocation4 + $0x34] ss:$12 sps:$4 sm:$0xff]   ;;  %950 = vmatpush3.bf16.msra.mxu1 %v1110_v23  ;;  %v1073_v28 = vld [vmem:[#allocation4 + $0x4c] ss:$12 sps:$4 sm:$0xff]   ;;  %v1076_v31 = vld [vmem:[#allocation4 + $0x64] ss:$12 sps:$4 sm:$0xff]  }
  0x40   :  { %951 = vmatprep.subr.bf16.mxu1 %v1222_v1  ;;  %v1112_v29 = vld [vmem:[#allocation6 + $0x38] ss:$12 sps:$4 sm:$0xff]   ;;  %v1071_v30 = vld [vmem:[#allocation4 + $0x48] ss:$12 sps:$4 sm:$0xff]   ;;  %v1113_v32 = vld [vmem:[#allocation6 + $0x50] ss:$12 sps:$4 sm:$0xff]  }
  0x41   :  { %274 = vmatpush1.bf16.msra.mxu0 %v1046_v7  ;;  %v1074_v33 = vld [vmem:[#allocation4 + $0x60] ss:$12 sps:$4 sm:$0xff]   ;;  %v1079_v34 = vld [vmem:[#allocation4 + $0x7c] ss:$12 sps:$4 sm:$0xff]   ;;  %v1077_v36 = vld [vmem:[#allocation4 + $0x78] ss:$12 sps:$4 sm:$0xff]  }
  0x42   :  { %275 = vmatprep.subr.bf16.mxu0 %v1047_v8  ;;  %v1114_v35 = vld [vmem:[#allocation6 + $0x68] ss:$12 sps:$4 sm:$0xff]   ;;  %v1115_v38 = vld [vmem:[#allocation6 + $0x80] ss:$12 sps:$4 sm:$0xff]   ;;  %v1080_v39 = vld [vmem:[#allocation4 + $0x90] ss:$12 sps:$4 sm:$0xff]  }
  0x43   :  { %952 = vmatpush3.bf16.msra.mxu1 %v1111_v26  ;;  %v1082_v37 = vld [vmem:[#allocation4 + $0x94] ss:$12 sps:$4 sm:$0xff]   ;;  %v1085_v40 = vld [vmem:[#allocation4 + $0xac] ss:$12 sps:$4 sm:$0xff]   ;;  %v1117_v45 = vld [vmem:[#allocation6 + $0xb0] ss:$12 sps:$4 sm:$0xff]  }
  0x44   :  { %953 = vmatprep.subr.bf16.mxu1 %v1222_v1  ;;  %v1116_v41 = vld [vmem:[#allocation6 + $0x98] ss:$12 sps:$4 sm:$0xff]   ;;  %v1083_v42 = vld [vmem:[#allocation4 + $0xa8] ss:$12 sps:$4 sm:$0xff]   ;;  %v1119_v52 = vld [vmem:[#allocation4 + $0x20] ss:$12 sps:$4 sm:$0xff]  }
  0x45   :  { %276 = vmatpush1.bf16.msra.mxu0 %v1049_v9  ;;  %v73_v43 = vld [vmem:[%s1399_s1] sm:$0xf]  ;;  %v1088_v44 = vld [vmem:[#allocation2 + $0x4] ss:$8 sps:$4 sm:$0xff]   ;;  %v1086_v47 = vld [vmem:[#allocation2] ss:$8 sps:$4 sm:$0xff]  }
  0x46   :  { %277 = vmatprep.subr.bf16.mxu0 %v1050_v10  ;;  %v1332_v46 = vpack.c.bf16 %v73_v43, %v73_v43  ;;  %v1091_v48 = vld [vmem:[#allocation2 + $0x14] ss:$8 sps:$4 sm:$0xff]   ;;  %v1089_v50 = vld [vmem:[#allocation2 + $0x10] ss:$8 sps:$4 sm:$0xff]   ;;  %v1094_v51 = vld [vmem:[#allocation2 + $0x24] ss:$8 sps:$4 sm:$0xff]  }
  0x47   :  { %954 = vmatpush3.bf16.msra.mxu1 %v1112_v29  ;;  %v1118_v49 = vld [vmem:[#allocation4 + $0x8] ss:$12 sps:$4 sm:$0xff]   ;;  %v1120_v55 = vld [vmem:[#allocation4 + $0x38] ss:$12 sps:$4 sm:$0xff]   ;;  %v1121_v58 = vld [vmem:[#allocation4 + $0x50] ss:$12 sps:$4 sm:$0xff]  }
  0x48   :  { %955 = vmatprep.subr.bf16.mxu1 %v1222_v1  ;;  %v1092_v53 = vld [vmem:[#allocation2 + $0x20] ss:$8 sps:$4 sm:$0xff]   ;;  %v1097_v54 = vld [vmem:[#allocation2 + $0x34] ss:$8 sps:$4 sm:$0xff]   ;;  %v1095_v56 = vld [vmem:[#allocation2 + $0x30] ss:$8 sps:$4 sm:$0xff]  }
  0x49   :  { %278 = vmatpush1.bf16.msra.mxu0 %v1052_v11  ;;  %v1100_v57 = vld [vmem:[#allocation2 + $0x44] ss:$8 sps:$4 sm:$0xff]   ;;  %v1098_v59 = vld [vmem:[#allocation2 + $0x40] ss:$8 sps:$4 sm:$0xff]   ;;  %v1103_v60 = vld [vmem:[#allocation2 + $0x54] ss:$8 sps:$4 sm:$0xff]  }
  0x4a   :  { %279 = vmatprep.subr.bf16.mxu0 %v1053_v12  ;;  %v1122_v61 = vld [vmem:[#allocation4 + $0x68] ss:$12 sps:$4 sm:$0xff]   ;;  %v1101_v62 = vld [vmem:[#allocation2 + $0x50] ss:$8 sps:$4 sm:$0xff]   ;;  %v1106_v63 = vld [vmem:[#allocation2 + $0x64] ss:$8 sps:$4 sm:$0xff]  }
  0x4b   :  { %956 = vmatpush3.bf16.msra.mxu1 %v1113_v32  ;;  %v1104_v2 = vld [vmem:[#allocation2 + $0x60] ss:$8 sps:$4 sm:$0xff]   ;;  %v1109_v3 = vld [vmem:[#allocation2 + $0x74] ss:$8 sps:$4 sm:$0xff]   ;;  %v1124_v4 = vld [vmem:[#allocation4 + $0x98] ss:$12 sps:$4 sm:$0xff]  }
  0x4c   :  { %957 = vmatprep.subr.bf16.mxu1 %v1222_v1  ;;  %v1107_v5 = vld [vmem:[#allocation2 + $0x70] ss:$8 sps:$4 sm:$0xff]   ;;  %v1127_v10 = vld [vmem:[%s1404_s6 + $0x8] sm:$0xff]   ;;  %v1128_v11 = vld [vmem:[%s1404_s6 + $0x10] sm:$0xff]  }
  0x4d   :  { %280 = vmatpush1.bf16.msra.mxu0 %v1055_v13  ;;  %v1349_v6 = vld [vmem:[%s1398_s0] sm:$0xf]  ;;  %v1125_v7 = vld [vmem:[#allocation4 + $0xb0] ss:$12 sps:$4 sm:$0xff]  }
  0x4e   :  { %281 = vmatprep.subr.bf16.mxu0 %v1056_v14  ;;  %v72_v8 = vpack.c.bf16 %v1349_v6, %v1349_v6  ;;  %v1126_v9 = vld [vmem:[%s1404_s6] sm:$0xff]   ;;  %v1129_v12 = vld [vmem:[%s1404_s6 + $0x18] sm:$0xff]   ;;  %v1131_v14 = vld [vmem:[%s1404_s6 + $0x28] sm:$0xff]  }
  0x4f   :  { %958 = vmatpush3.bf16.msra.mxu1 %v1114_v35  ;;  %v1130_v13 = vld [vmem:[%s1404_s6 + $0x20] sm:$0xff]  }
  0x50   :  { %959 = vmatprep.subr.bf16.mxu1 %v1222_v1 }
  0x51   :  { %282 = vmatpush1.bf16.msra.mxu0 %v1058_v15  ;;  %v1132_v15 = vld [vmem:[%s1404_s6 + $0x30] sm:$0xff]  }
  0x52   :  { %283 = vmatprep.subr.bf16.mxu0 %v1059_v16  ;;  %v1133_v16 = vld [vmem:[%s1404_s6 + $0x38] sm:$0xff]  }
  0x53   :  { %960 = vmatpush3.bf16.msra.mxu1 %v1115_v38 }
  0x54   :  { %961 = vmatprep.subr.bf16.mxu1 %v1222_v1 }
  0x55   :  { %284 = vmatpush1.bf16.msra.mxu0 %v1061_v17  ;;  %v561_v17 = vlaneseq }
  0x56   :  { %478 = vmatprep.subr.bf16.mxu0 %v1064_v19 }
  0x57   :  { %962 = vmatpush3.bf16.msra.mxu1 %v1116_v41  ;;  %v562_v18 = vshrl.u32 %v561_v17, 7 }
  0x58   :  { %302 = vmatmul.mubr.bf16.vlgmr.msra.gmra.mrb[0].mxu0 %v1318_v20  ;;  %963 = vmatprep.subr.bf16.mxu1 %v1222_v1 }
  0x59   :  { %479 = vmatpush1.bf16.msra.mxu0 %v1062_v21  ;;  %510 = vmatprep.mubr.bf16.mxu0 %v1221_v0  ;;  %v567_v19 = vsub.s32 1, %v562_v18  ;;  %v563_v32 = vsub.s32 0, %v562_v18 }
  0x5a   :  { %480 = vmatprep.subr.bf16.mxu0 %v1067_v22 }
  0x5b   :  { %964 = vmatpush3.bf16.msra.mxu1 %v1117_v45 }
  0x5c   :  { %969 = vmatprep.subr.bf16.mxu1 %v1222_v1 }
  0x5d   :  { %481 = vmatpush1.bf16.msra.mxu0 %v1065_v24 }
  0x5e   :  { %482 = vmatprep.subr.bf16.mxu0 %v1070_v25  ;;  %966 = vmatmul.mubr.bf16.vlgmr.msra.gmra.mrb[0].mxu1 %v1318_v20  ;;  %v559_v20 = vld [vmem:[%s1405_s7] sm:$0x7] }
  0x5f   :  { %970 = vmatpush3.bf16.msra.mxu1 %v1118_v49  ;;  %985 = vmatprep.mubr.msk.bf16.mxu1 %vm1223_vm0, %v1222_v1  ;;  %v568_v21 = vrot.slane %v559_v20, %v567_v19 }
  0x60   :  { %971 = vmatprep.subr.bf16.mxu1 %v1222_v1 }
  0x61   :  { %483 = vmatpush1.bf16.msra.mxu0 %v1068_v27 }
  0x62   :  { %484 = vmatprep.subr.bf16.mxu0 %v1073_v28 }
  0x63   :  { %972 = vmatpush3.bf16.msra.mxu1 %v1119_v52 }
  0x64   :  { %973 = vmatprep.subr.bf16.mxu1 %v1222_v1 }
  0x65   :  { %485 = vmatpush1.bf16.msra.mxu0 %v1071_v30 }
  0x66   :  { %486 = vmatprep.subr.bf16.mxu0 %v1076_v31 }
  0x67   :  { %974 = vmatpush3.bf16.msra.mxu1 %v1120_v55 }
  0x68   :  { %975 = vmatprep.subr.bf16.mxu1 %v1222_v1 }
  0x69   :  { %487 = vmatpush1.bf16.msra.mxu0 %v1074_v33  ;;  %v564_v33 = vrot.slane %v559_v20, %v563_v32 }
  0x6a   :  { %488 = vmatprep.subr.bf16.mxu0 %v1079_v34 }
  0x6b   :  { %976 = vmatpush3.bf16.msra.mxu1 %v1121_v58 }
  0x6c   :  { %977 = vmatprep.subr.bf16.mxu1 %v1222_v1 }
  0x6d   :  { %489 = vmatpush1.bf16.msra.mxu0 %v1077_v36  ;;  %v571_v36 = vsub.s32 2, %v562_v18 }
  0x6e   :  { %490 = vmatprep.subr.bf16.mxu0 %v1082_v37 }
  0x6f   :  { %978 = vmatpush3.bf16.msra.mxu1 %v1122_v61  ;;  %v572_v37 = vrot.slane %v559_v20, %v571_v36 }
  0x70   :  { %979 = vmatprep.subr.bf16.mxu1 %v1222_v1 }
  0x71   :  { %491 = vmatpush1.bf16.msra.mxu0 %v1080_v39 }
  0x72   :  { %492 = vmatprep.subr.bf16.mxu0 %v1085_v40 }
  0x75   :  { %493 = vmatpush1.bf16.msra.mxu0 %v1083_v42 }
  0x76   :  { %675 = vmatprep.subr.bf16.mxu0 %v1088_v44 }
  0x78   :  { %511 = vmatmul.mubr.bf16.vlgmr.msra.gmra.mrb[0].mxu0 %v1332_v46 }
  0x79   :  { %676 = vmatpush1.bf16.msra.mxu0 %v1086_v47  ;;  %707 = vmatprep.mubr.bf16.mxu0 %v1221_v0  ;;  %v1123_v0 = vld [vmem:[#allocation4 + $0x80] ss:$12 sps:$4 sm:$0xff]  }
  0x7a   :  { %677 = vmatprep.subr.bf16.mxu0 %v1091_v48  ;;  %980 = vmatpush3.bf16.msra.mxu1 %v1123_v0 }
  0x7b   :  { %981 = vmatprep.subr.bf16.mxu1 %v1222_v1 }
  0x7d   :  { %678 = vmatpush1.bf16.msra.mxu0 %v1089_v50 }
  0x7e   :  { %679 = vmatprep.subr.bf16.mxu0 %v1094_v51  ;;  %982 = vmatpush3.bf16.msra.mxu1 %v1124_v4 }
  0x7f   :  { %983 = vmatprep.subr.bf16.mxu1 %v1222_v1 }
  0x81   :  { %680 = vmatpush1.bf16.msra.mxu0 %v1092_v53 }
  0x82   :  { %681 = vmatprep.subr.bf16.mxu0 %v1097_v54  ;;  %984 = vmatpush3.bf16.msra.mxu1 %v1125_v7 }
  0x83   :  { %989 = vmatprep.subr.bf16.mxu1 %v1222_v1 }
  0x85   :  { %682 = vmatpush1.bf16.msra.mxu0 %v1095_v56  ;;  %986 = vmatmul.mubr.bf16.vlgmr.msra.gmra.mrb[0].mxu1 %v1332_v46 }
  0x86   :  { %683 = vmatprep.subr.bf16.mxu0 %v1100_v57  ;;  %1005 = vmatprep.mubr.msk.bf16.mxu1 %vm1223_vm0, %v1222_v1 }
  0x87   :  { %990 = vmatpush3.bf16.msra.mxu1 %v1126_v9 }
  0x88   :  { %991 = vmatprep.subr.bf16.mxu1 %v1222_v1 }
  0x89   :  { %684 = vmatpush1.bf16.msra.mxu0 %v1098_v59 }
  0x8a   :  { %685 = vmatprep.subr.bf16.mxu0 %v1103_v60 }
  0x8b   :  { %992 = vmatpush3.bf16.msra.mxu1 %v1127_v10 }
  0x8c   :  { %993 = vmatprep.subr.bf16.mxu1 %v1222_v1 }
  0x8d   :  { %686 = vmatpush1.bf16.msra.mxu0 %v1101_v62 }
  0x8e   :  { %687 = vmatprep.subr.bf16.mxu0 %v1106_v63 }
  0x8f   :  { %994 = vmatpush3.bf16.msra.mxu1 %v1128_v11 }
  0x90   :  { %995 = vmatprep.subr.bf16.mxu1 %v1222_v1 }
  0x91   :  { %688 = vmatpush1.bf16.msra.mxu0 %v1104_v2 }
  0x92   :  { %689 = vmatprep.subr.bf16.mxu0 %v1109_v3 }
  0x93   :  { %996 = vmatpush3.bf16.msra.mxu1 %v1129_v12 }
  0x94   :  { %997 = vmatprep.subr.bf16.mxu1 %v1222_v1 }
  0x95   :  { %690 = vmatpush1.bf16.msra.mxu0 %v1107_v5 }
  0x97   :  { %998 = vmatpush3.bf16.msra.mxu1 %v1130_v13 }
  0x98   :  { %708 = vmatmul.mubr.bf16.vlgmr.msra.gmra.mrb[0].mxu0 %v72_v8  ;;  %999 = vmatprep.subr.bf16.mxu1 %v1222_v1 }
  0x9b   :  { %1000 = vmatpush3.bf16.msra.mxu1 %v1131_v14 }
  0x9c   :  { %1001 = vmatprep.subr.bf16.mxu1 %v1222_v1 }
  0x9f   :  { %1002 = vmatpush3.bf16.msra.mxu1 %v1132_v15 }
  0xa0   :  { %1003 = vmatprep.subr.bf16.mxu1 %v1222_v1 }
  0xa3   :  { %1004 = vmatpush3.bf16.msra.mxu1 %v1133_v16 }
 0x16b   :  { %v709_v22 = vpop.f32.mrb[0].mxu0 }
 0x16c   :  { %v711_v23 = vpop.f32.mrb[1].mxu0  ;;  %v1009_v34 = vadd.f32 %v709_v22, %v564_v33 }
 0x16d   :  { %v1010_v24 = vadd.f32 %v711_v23, %v568_v21  ;;  %v713_v25 = vpop.f32.mrb[2].mxu0 }
 0x16e   :  { %v714_v26 = vpop.f32.mrb[3].mxu0  ;;  %v912_v35 = vmul.f32 -1.442695, %v1009_v34 }
 0x16f   :  { %v913_v27 = vmul.f32 -1.442695, %v1010_v24 }
 0x171   :  { %1134 = vpow2.f32 %v913_v27 }
 0x17b   :  { %v1135_v28 = vpop.eup %1134 }
 0x17c   :  { %v725_v29 = vadd.f32 1.0, %v1135_v28 }
 0x17e   :  { %1136 = vrcp.f32 %v725_v29 }
 0x17f   :  { %1138 = vpow2.f32 %v912_v35 }
 0x188   :  { %v1137_v1 = vpop.eup %1136 }
 0x189   :  { %v730_v30 = vmul.f32 %v1137_v1, %v1349_v6  ;;  %v1139_v38 = vpop.eup %1138 }
 0x18a   :  { %v724_v40 = vadd.f32 1.0, %v1139_v38 }
 0x18b   :  { %v731_v31 = vpack.c.bf16 %v730_v30, %v730_v30 }
 0x18d   :  { %1006 = vmatmul.mubr.bf16.vlgmr.msra.gmra.mrb[0].mxu1 %v731_v31 }
 0x260   :  { %v830_v39 = vpop.f32.mrb[0].mxu1 }
 0x261   :  { %v1011_v41 = vadd.f32 %v830_v39, %v572_v37  ;;  %v1007_v42 = vpop.f32.mrb[1].mxu1 }
 0x262   :  { %v833_v43 = vpop.f32.mrb[2].mxu1 }
 0x263   :  { %1140 = vtanh.f32 %v1011_v41  ;;  %v1008_v44 = vpop.f32.mrb[3].mxu1 }
 0x264   :  { %1142 = vrcp.f32 %v724_v40 }
 0x26d   :  { %v1141_v45 = vpop.eup %1140 }
 0x26e   :  { %v838_v46 = vsub.f32 %v1141_v45, %v1349_v6  ;;  %v1143_v47 = vpop.eup %1142 }
 0x270   :  { %v839_v48 = vmul.f32 %v1143_v47, %v838_v46 }
 0x272   :  { %v840_v49 = vadd.f32 %v839_v48, %v1349_v6 }
 0x274   :  { %841 = vst [vmem:[%s1406_s8] sm:$0xf] %v840_v49 }
 0x275   :  { %846 = vsyncpa [#allocation3], 1 }
 0x276   :  { %847 = vsyncpa [#allocation5], 1 }

</bundles_post_ra>
